<compile_context>
chip_gen: v5e
topology: v5e:2x2
jax: 0.10.0
libtpu: 0.0.40
codegen_flags: <defaults>
</compile_context>

<pallas_src>
import functools
import math

import numpy as np
import jax
import jax.numpy as jnp
from jax.experimental import pallas as pl
from jax.experimental.pallas import tpu as pltpu


def emwavenet_kernel(bb, xr_ref, xi_ref, modr_ref, modi_ref, a_ref, b_ref,
                     out_ref, xr_acc, xi_acc, mtr, mti, ts_scr, zs_scr):
    """One grid step = one (batch column block, layer) pair.

    Grid = (nblk, L); L is the trailing ("arbitrary") axis so all layers of a
    column block run back to back while the field is carried in VMEM scratch.
    """
    N, cols = xr_acc.shape
    l = pl.program_id(1)

    # First layer of this column block: load the input field into the carried
    # scratch accumulators.
    @pl.when(l == 0)
    def _():
        xr_acc[...] = xr_ref[...]
        xi_acc[...] = xi_ref[...]

    # Tile this layer's untiled (N, N) modulation mask across the bb folded
    # batch column blocks (a few cheap masked lane stores; bb is static/small).
    mr = modr_ref[0]
    mi = modi_ref[0]
    for j in range(bb):
        mtr[:, j * N:(j + 1) * N] = mr
        mti[:, j * N:(j + 1) * N] = mi

    # x <- x * modulation (complex Hadamard, f32), written straight into the
    # stacked [real; imag] left-matmul operand (single cast to the MXU dtype).
    xr = xr_acc[...]
    xi = xi_acc[...]
    mtr_v = mtr[...]
    mti_v = mti[...]
    ts_scr[:N, :] = (xr * mtr_v - xi * mti_v).astype(ts_scr.dtype)
    ts_scr[N:, :] = (xr * mti_v + xi * mtr_v).astype(ts_scr.dtype)

    # propagate(x) = ifft2(fft2(x) * H) == A @ x @ kron(I_bb, B)   (H folded
    # into A and B in the wrapper).  Two stacked-real MXU matmuls, f32 accum.
    ys = jnp.dot(a_ref[...], ts_scr[...], preferred_element_type=jnp.float32)
    zs_scr[:, :cols] = ys[:N, :].astype(zs_scr.dtype)
    zs_scr[:, cols:] = ys[N:, :].astype(zs_scr.dtype)
    ws = jnp.dot(zs_scr[...], b_ref[...], preferred_element_type=jnp.float32)

    wr = ws[:, :cols]
    wi = ws[:, cols:]
    xr_acc[...] = wr
    xi_acc[...] = wi

    # Last layer: emit the output energy |x|^2 for this column block.
    @pl.when(l == pl.num_programs(1) - 1)
    def _():
        out_ref[...] = wr * wr + wi * wi


def _pick_batch_fold(batch, n, max_cols=512):
    """Batch elements folded onto the lane axis per grid step (lane alignment)."""
    bb = 128 // math.gcd(n, 128)          # smallest bb with (bb * n) % 128 == 0
    if bb * n > max_cols:
        # Lane alignment would need a huge fold (e.g. odd n): fall back to one
        # full-batch block (block dim == full array dim is always legal).
        return max(batch, 1)
    return bb


def _vmem_limit_bytes():
    """Generation-aware VMEM budget: ~3/4 of physical, capped at 100 MiB."""
    cap = 64 * 1024 * 1024                # conservative default (v7x per-core)
    try:
        cap = int(getattr(pltpu.get_tpu_info(), "vmem_capacity_bytes", cap))
    except Exception:
        pass
    return int(min(max(cap * 3 // 4, 32 * 1024 * 1024), 100 * 1024 * 1024))


def emwavenet_forward(x_real, x_imag, amplitudes, phases, wavelength, distance,
                      mm_dtype=jnp.bfloat16):
    """Pallas implementation of EMWaveNet.forward.

    x_real, x_imag : (B, N, N) float32 -- real/imag parts of the complex input.
    amplitudes     : (L, N, N) float32
    phases         : (L, N, N) float32
    mm_dtype       : MXU matmul operand dtype (bf16 fast path / f32 strict).
    Returns (B, N, N) float32 energy |x|^2.
    """
    num_layers, N, _ = amplitudes.shape
    B = x_real.shape[0]
    k = 2.0 * np.pi / wavelength

    bb = _pick_batch_fold(B, N)
    B_pad = -(-B // bb) * bb              # pad batch up to a multiple of bb
    nblk = B_pad // bb
    cols = bb * N

    # ---- per-layer modulation (untiled; streamed one layer per grid step) ----
    mod = amplitudes.astype(jnp.complex64) * jnp.exp(1j * (k * phases))
    modr = jnp.real(mod).astype(jnp.float32)
    modi = jnp.imag(mod).astype(jnp.float32)

    # ---- propagation operator with H folded into the DFT factors (host f64) --
    # fft2(u) = F u F (F symmetric);  H(fx,fy) = e^{ikd} h(fx) h(fy) separable
    #   => ifft2(fft2(u)*H) = A u B,  A = e^{ikd} Finv diag(h) F,  B = F diag(h) Finv
    idx = np.arange(N)
    ang = 2.0 * np.pi * np.outer(idx, idx) / N
    F = np.exp(-1j * ang)
    Finv = np.exp(1j * ang) / N
    freq = np.fft.fftfreq(N)
    h = np.exp(-1j * k * distance * (wavelength ** 2 / 2.0) * freq ** 2)
    A = np.exp(1j * k * distance) * (Finv @ (h[:, None] * F))
    Bm = F @ (h[:, None] * Finv)
    Bbd = np.kron(np.eye(bb), Bm)         # block-diagonal right factor

    # Stacked-real forms: one real matmul per complex matmul, no Gauss fixups.
    As = np.block([[A.real, -A.imag], [A.imag, A.real]])             # (2N, 2N)
    Bs = np.block([[Bbd.real, Bbd.imag], [-Bbd.imag, Bbd.real]])     # (2c, 2c)
    As = jnp.asarray(As, dtype=mm_dtype)
    Bs = jnp.asarray(Bs, dtype=mm_dtype)

    # ---- field in column layout: x_col[:, b*N + j] == x[b, :, j] ----
    xr = x_real.astype(jnp.float32)
    xi = x_imag.astype(jnp.float32)
    if B_pad != B:
        pad = ((0, B_pad - B), (0, 0), (0, 0))
        xr = jnp.pad(xr, pad)
        xi = jnp.pad(xi, pad)
    xr_col = jnp.transpose(xr, (1, 0, 2)).reshape(N, B_pad * N)
    xi_col = jnp.transpose(xi, (1, 0, 2)).reshape(N, B_pad * N)

    # ---- pallas_call ----
    field_spec = pl.BlockSpec((N, cols), lambda g, l: (0, g))
    mod_spec = pl.BlockSpec((1, N, N), lambda g, l: (l, 0, 0))
    a_spec = pl.BlockSpec((2 * N, 2 * N), lambda g, l: (0, 0))
    b_spec = pl.BlockSpec((2 * cols, 2 * cols), lambda g, l: (0, 0))

    scratch = [
        pltpu.VMEM((N, cols), jnp.float32),      # xr_acc (carried field, real)
        pltpu.VMEM((N, cols), jnp.float32),      # xi_acc (carried field, imag)
        pltpu.VMEM((N, cols), jnp.float32),      # batch-tiled mask (real)
        pltpu.VMEM((N, cols), jnp.float32),      # batch-tiled mask (imag)
        pltpu.VMEM((2 * N, cols), mm_dtype),     # stacked [re; im] left operand
        pltpu.VMEM((N, 2 * cols), mm_dtype),     # stacked [re | im] right operand
    ]

    kernel = functools.partial(emwavenet_kernel, bb)
    energy_col = pl.pallas_call(
        kernel,
        out_shape=jax.ShapeDtypeStruct((N, B_pad * N), jnp.float32),
        grid=(nblk, num_layers),
        in_specs=[field_spec, field_spec, mod_spec, mod_spec, a_spec, b_spec],
        out_specs=field_spec,
        scratch_shapes=scratch,
        compiler_params=pltpu.CompilerParams(
            dimension_semantics=("parallel", "arbitrary"),
            vmem_limit_bytes=_vmem_limit_bytes()),
    )(xr_col, xi_col, modr, modi, As, Bs)

    # Back to the PyTorch layout (B, N, N); drop the batch padding.
    energy = energy_col.reshape(N, B_pad, N).transpose(1, 0, 2)
    return energy[:B]


def emwavenet_reference(x_complex, amplitudes, phases, wavelength, distance):
    """Plain-JAX reference mirroring the PyTorch forward exactly."""
    k = 2.0 * np.pi / wavelength
    N = x_complex.shape[-1]
    freq = jnp.fft.fftfreq(N)
    Hf = jnp.exp(1j * k * distance
                 * (1.0 - wavelength ** 2 / 2.0
                    * (freq[:, None] ** 2 + freq[None, :] ** 2)))
    x = x_complex
    for l in range(amplitudes.shape[0]):
        x = x * (amplitudes[l] * jnp.exp(1j * k * phases[l]))
        x = jnp.fft.ifft2(jnp.fft.fft2(x) * Hf)
    return jnp.abs(x) ** 2


if __name__ == "__main__":
    # Small, deterministic configuration.
    num_layers = 3
    layer_size = 16          # N x N field
    batch = 2
    num_classes = 4          # declared by the module __init__ but unused in forward
    wavelength = 0.5
    distance = 1.0

    key = jax.random.PRNGKey(0)
    k_xr, k_xi, k_amp, k_ph = jax.random.split(key, 4)

    x_real = jax.random.normal(k_xr, (batch, layer_size, layer_size), jnp.float32)
    x_imag = jax.random.normal(k_xi, (batch, layer_size, layer_size), jnp.float32)

    # Deterministic "trained" parameters (module init is ones/zeros; perturb so
    # the computation is nontrivial).
    amplitudes = (jnp.ones((num_layers, layer_size, layer_size), jnp.float32)
                  + 0.1 * jax.random.normal(k_amp,
                                            (num_layers, layer_size, layer_size),
                                            jnp.float32))
    phases = 0.1 * jax.random.normal(k_ph,
                                     (num_layers, layer_size, layer_size),
                                     jnp.float32)

    # Strict-accuracy path (f32 MXU operands) and the bf16 fast path.
    energy_f32 = emwavenet_forward(x_real, x_imag, amplitudes, phases,
                                   wavelength, distance, mm_dtype=jnp.float32)
    energy_bf16 = emwavenet_forward(x_real, x_imag, amplitudes, phases,
                                    wavelength, distance, mm_dtype=jnp.bfloat16)
    jax.block_until_ready((energy_f32, energy_bf16))

    ref = np.asarray(jax.block_until_ready(
        emwavenet_reference(x_real + 1j * x_imag, amplitudes, phases,
                            wavelength, distance)))

    # 1) Algorithmic correctness: f32 path vs. exact complex64 FFT reference.
    np.testing.assert_allclose(np.asarray(energy_f32), ref, rtol=2e-2, atol=2e-3)

    # 2) bf16 MXU fast path: tolerances appropriate for bf16 matmul operands.
    bf16 = np.asarray(energy_bf16)
    rel_l2 = float(np.linalg.norm(bf16 - ref) / np.linalg.norm(ref))
    assert rel_l2 < 8e-2, f"bf16 path relative L2 error too large: {rel_l2}"
    np.testing.assert_allclose(bf16, ref, rtol=1.5e-1, atol=8e-2)

    print("KERNEL_OK")
</pallas_src>

<mosaic_0001>
module attributes {stable_mosaic.version = 11 : i64} {
  func.func @emwavenet_kernel(%arg0: i32, %arg1: i32, %arg2: memref<16x128xf32, #tpu.memory_space<vmem>>, %arg3: memref<16x128xf32, #tpu.memory_space<vmem>>, %arg4: memref<1x16x16xf32, #tpu.memory_space<vmem>>, %arg5: memref<1x16x16xf32, #tpu.memory_space<vmem>>, %arg6: memref<32x32xf32, #tpu.memory_space<vmem>>, %arg7: memref<256x256xf32, #tpu.memory_space<vmem>>, %arg8: memref<16x128xf32, #tpu.memory_space<vmem>>, %arg9: memref<16x128xf32, #tpu.memory_space<vmem>>, %arg10: memref<16x128xf32, #tpu.memory_space<vmem>>, %arg11: memref<16x128xf32, #tpu.memory_space<vmem>>, %arg12: memref<16x128xf32, #tpu.memory_space<vmem>>, %arg13: memref<32x128xf32, #tpu.memory_space<vmem>>, %arg14: memref<16x256xf32, #tpu.memory_space<vmem>>) attributes {dimension_semantics = [#tpu.dimension_semantics<parallel>, #tpu.dimension_semantics<arbitrary>], iteration_bounds = array<i64: 1, 3>, scalar_prefetch = 0 : i64, scratch_operands = 6 : i64, tpu.core_type = #tpu.core_type<tc>, window_params = [{transform_indices = @transform_0, window_bounds = array<i64: 16, 128>}, {transform_indices = @transform_1, window_bounds = array<i64: 16, 128>}, {transform_indices = @transform_2, window_bounds = array<i64: 1, 16, 16>}, {transform_indices = @transform_3, window_bounds = array<i64: 1, 16, 16>}, {pipeline_mode = #tpu.pipeline_mode<synchronous>, transform_indices = @transform_4, window_bounds = array<i64: 32, 32>}, {pipeline_mode = #tpu.pipeline_mode<synchronous>, transform_indices = @transform_5, window_bounds = array<i64: 256, 256>}, {transform_indices = @transform_6, window_bounds = array<i64: 16, 128>}]} {
    %c0_i32 = arith.constant 0 : i32
    %0 = arith.cmpi eq, %arg1, %c0_i32 : i32
    %1 = arith.extui %0 : i1 to i32
    %c0_i32_0 = arith.constant 0 : i32
    %2 = arith.cmpi ne, %1, %c0_i32_0 : i32
    scf.if %2 {
      %c0_60 = arith.constant 0 : index
      %c0_61 = arith.constant 0 : index
      %52 = vector.load %arg2[%c0_60, %c0_61] : memref<16x128xf32, #tpu.memory_space<vmem>>, vector<16x128xf32>
      %c0_62 = arith.constant 0 : index
      %c0_63 = arith.constant 0 : index
      %53 = vector.load %arg9[%c0_62, %c0_63] : memref<16x128xf32, #tpu.memory_space<vmem>>, vector<16x128xf32>
      tpu.vector_store %arg9[%c0_62, %c0_63], %52 {strides = array<i32>} : memref<16x128xf32, #tpu.memory_space<vmem>>, vector<16x128xf32>,
      %c0_64 = arith.constant 0 : index
      %c0_65 = arith.constant 0 : index
      %54 = vector.load %arg3[%c0_64, %c0_65] : memref<16x128xf32, #tpu.memory_space<vmem>>, vector<16x128xf32>
      %c0_66 = arith.constant 0 : index
      %c0_67 = arith.constant 0 : index
      %55 = vector.load %arg10[%c0_66, %c0_67] : memref<16x128xf32, #tpu.memory_space<vmem>>, vector<16x128xf32>
      tpu.vector_store %arg10[%c0_66, %c0_67], %54 {strides = array<i32>} : memref<16x128xf32, #tpu.memory_space<vmem>>, vector<16x128xf32>,
    } else {
    }
    %c0 = arith.constant 0 : index
    %c0_1 = arith.constant 0 : index
    %c0_2 = arith.constant 0 : index
    %3 = vector.load %arg4[%c0, %c0_1, %c0_2] : memref<1x16x16xf32, #tpu.memory_space<vmem>>, vector<1x16x16xf32>
    %4 = vector.shape_cast %3 : vector<1x16x16xf32> to vector<16x16xf32>
    %c0_3 = arith.constant 0 : index
    %c0_4 = arith.constant 0 : index
    %c0_5 = arith.constant 0 : index
    %5 = vector.load %arg5[%c0_3, %c0_4, %c0_5] : memref<1x16x16xf32, #tpu.memory_space<vmem>>, vector<1x16x16xf32>
    %6 = vector.shape_cast %5 : vector<1x16x16xf32> to vector<16x16xf32>
    %c0_6 = arith.constant 0 : index
    %c0_7 = arith.constant 0 : index
    %7 = vector.load %arg11[%c0_6, %c0_7] : memref<16x128xf32, #tpu.memory_space<vmem>>, vector<16x16xf32>
    tpu.vector_store %arg11[%c0_6, %c0_7], %4 {strides = array<i32>} : memref<16x128xf32, #tpu.memory_space<vmem>>, vector<16x16xf32>,
    %c0_8 = arith.constant 0 : index
    %c0_9 = arith.constant 0 : index
    %8 = vector.load %arg12[%c0_8, %c0_9] : memref<16x128xf32, #tpu.memory_space<vmem>>, vector<16x16xf32>
    tpu.vector_store %arg12[%c0_8, %c0_9], %6 {strides = array<i32>} : memref<16x128xf32, #tpu.memory_space<vmem>>, vector<16x16xf32>,
    %c0_10 = arith.constant 0 : index
    %c16 = arith.constant 16 : index
    %9 = vector.load %arg11[%c0_10, %c16] : memref<16x128xf32, #tpu.memory_space<vmem>>, vector<16x16xf32>
    tpu.vector_store %arg11[%c0_10, %c16], %4 {strides = array<i32>} : memref<16x128xf32, #tpu.memory_space<vmem>>, vector<16x16xf32>,
    %c0_11 = arith.constant 0 : index
    %c16_12 = arith.constant 16 : index
    %10 = vector.load %arg12[%c0_11, %c16_12] : memref<16x128xf32, #tpu.memory_space<vmem>>, vector<16x16xf32>
    tpu.vector_store %arg12[%c0_11, %c16_12], %6 {strides = array<i32>} : memref<16x128xf32, #tpu.memory_space<vmem>>, vector<16x16xf32>,
    %c0_13 = arith.constant 0 : index
    %c32 = arith.constant 32 : index
    %11 = vector.load %arg11[%c0_13, %c32] : memref<16x128xf32, #tpu.memory_space<vmem>>, vector<16x16xf32>
    tpu.vector_store %arg11[%c0_13, %c32], %4 {strides = array<i32>} : memref<16x128xf32, #tpu.memory_space<vmem>>, vector<16x16xf32>,
    %c0_14 = arith.constant 0 : index
    %c32_15 = arith.constant 32 : index
    %12 = vector.load %arg12[%c0_14, %c32_15] : memref<16x128xf32, #tpu.memory_space<vmem>>, vector<16x16xf32>
    tpu.vector_store %arg12[%c0_14, %c32_15], %6 {strides = array<i32>} : memref<16x128xf32, #tpu.memory_space<vmem>>, vector<16x16xf32>,
    %c0_16 = arith.constant 0 : index
    %c48 = arith.constant 48 : index
    %13 = vector.load %arg11[%c0_16, %c48] : memref<16x128xf32, #tpu.memory_space<vmem>>, vector<16x16xf32>
    tpu.vector_store %arg11[%c0_16, %c48], %4 {strides = array<i32>} : memref<16x128xf32, #tpu.memory_space<vmem>>, vector<16x16xf32>,
    %c0_17 = arith.constant 0 : index
    %c48_18 = arith.constant 48 : index
    %14 = vector.load %arg12[%c0_17, %c48_18] : memref<16x128xf32, #tpu.memory_space<vmem>>, vector<16x16xf32>
    tpu.vector_store %arg12[%c0_17, %c48_18], %6 {strides = array<i32>} : memref<16x128xf32, #tpu.memory_space<vmem>>, vector<16x16xf32>,
    %c0_19 = arith.constant 0 : index
    %c64 = arith.constant 64 : index
    %15 = vector.load %arg11[%c0_19, %c64] : memref<16x128xf32, #tpu.memory_space<vmem>>, vector<16x16xf32>
    tpu.vector_store %arg11[%c0_19, %c64], %4 {strides = array<i32>} : memref<16x128xf32, #tpu.memory_space<vmem>>, vector<16x16xf32>,
    %c0_20 = arith.constant 0 : index
    %c64_21 = arith.constant 64 : index
    %16 = vector.load %arg12[%c0_20, %c64_21] : memref<16x128xf32, #tpu.memory_space<vmem>>, vector<16x16xf32>
    tpu.vector_store %arg12[%c0_20, %c64_21], %6 {strides = array<i32>} : memref<16x128xf32, #tpu.memory_space<vmem>>, vector<16x16xf32>,
    %c0_22 = arith.constant 0 : index
    %c80 = arith.constant 80 : index
    %17 = vector.load %arg11[%c0_22, %c80] : memref<16x128xf32, #tpu.memory_space<vmem>>, vector<16x16xf32>
    tpu.vector_store %arg11[%c0_22, %c80], %4 {strides = array<i32>} : memref<16x128xf32, #tpu.memory_space<vmem>>, vector<16x16xf32>,
    %c0_23 = arith.constant 0 : index
    %c80_24 = arith.constant 80 : index
    %18 = vector.load %arg12[%c0_23, %c80_24] : memref<16x128xf32, #tpu.memory_space<vmem>>, vector<16x16xf32>
    tpu.vector_store %arg12[%c0_23, %c80_24], %6 {strides = array<i32>} : memref<16x128xf32, #tpu.memory_space<vmem>>, vector<16x16xf32>,
    %c0_25 = arith.constant 0 : index
    %c96 = arith.constant 96 : index
    %19 = vector.load %arg11[%c0_25, %c96] : memref<16x128xf32, #tpu.memory_space<vmem>>, vector<16x16xf32>
    tpu.vector_store %arg11[%c0_25, %c96], %4 {strides = array<i32>} : memref<16x128xf32, #tpu.memory_space<vmem>>, vector<16x16xf32>,
    %c0_26 = arith.constant 0 : index
    %c96_27 = arith.constant 96 : index
    %20 = vector.load %arg12[%c0_26, %c96_27] : memref<16x128xf32, #tpu.memory_space<vmem>>, vector<16x16xf32>
    tpu.vector_store %arg12[%c0_26, %c96_27], %6 {strides = array<i32>} : memref<16x128xf32, #tpu.memory_space<vmem>>, vector<16x16xf32>,
    %c0_28 = arith.constant 0 : index
    %c112 = arith.constant 112 : index
    %21 = vector.load %arg11[%c0_28, %c112] : memref<16x128xf32, #tpu.memory_space<vmem>>, vector<16x16xf32>
    tpu.vector_store %arg11[%c0_28, %c112], %4 {strides = array<i32>} : memref<16x128xf32, #tpu.memory_space<vmem>>, vector<16x16xf32>,
    %c0_29 = arith.constant 0 : index
    %c112_30 = arith.constant 112 : index
    %22 = vector.load %arg12[%c0_29, %c112_30] : memref<16x128xf32, #tpu.memory_space<vmem>>, vector<16x16xf32>
    tpu.vector_store %arg12[%c0_29, %c112_30], %6 {strides = array<i32>} : memref<16x128xf32, #tpu.memory_space<vmem>>, vector<16x16xf32>,
    %c0_31 = arith.constant 0 : index
    %c0_32 = arith.constant 0 : index
    %23 = vector.load %arg9[%c0_31, %c0_32] : memref<16x128xf32, #tpu.memory_space<vmem>>, vector<16x128xf32>
    %c0_33 = arith.constant 0 : index
    %c0_34 = arith.constant 0 : index
    %24 = vector.load %arg10[%c0_33, %c0_34] : memref<16x128xf32, #tpu.memory_space<vmem>>, vector<16x128xf32>
    %c0_35 = arith.constant 0 : index
    %c0_36 = arith.constant 0 : index
    %25 = vector.load %arg11[%c0_35, %c0_36] : memref<16x128xf32, #tpu.memory_space<vmem>>, vector<16x128xf32>
    %c0_37 = arith.constant 0 : index
    %c0_38 = arith.constant 0 : index
    %26 = vector.load %arg12[%c0_37, %c0_38] : memref<16x128xf32, #tpu.memory_space<vmem>>, vector<16x128xf32>
    %27 = arith.mulf %23, %25 : vector<16x128xf32>
    %28 = arith.mulf %24, %26 : vector<16x128xf32>
    %29 = arith.subf %27, %28 : vector<16x128xf32>
    %c0_39 = arith.constant 0 : index
    %c0_40 = arith.constant 0 : index
    %30 = vector.load %arg13[%c0_39, %c0_40] : memref<32x128xf32, #tpu.memory_space<vmem>>, vector<16x128xf32>
    tpu.vector_store %arg13[%c0_39, %c0_40], %29 {strides = array<i32>} : memref<32x128xf32, #tpu.memory_space<vmem>>, vector<16x128xf32>,
    %31 = arith.mulf %23, %26 : vector<16x128xf32>
    %32 = arith.mulf %24, %25 : vector<16x128xf32>
    %33 = arith.addf %31, %32 : vector<16x128xf32>
    %c16_41 = arith.constant 16 : index
    %c0_42 = arith.constant 0 : index
    %34 = vector.load %arg13[%c16_41, %c0_42] : memref<32x128xf32, #tpu.memory_space<vmem>>, vector<16x128xf32>
    tpu.vector_store %arg13[%c16_41, %c0_42], %33 {strides = array<i32>} : memref<32x128xf32, #tpu.memory_space<vmem>>, vector<16x128xf32>,
    %c0_43 = arith.constant 0 : index
    %c0_44 = arith.constant 0 : index
    %35 = vector.load %arg6[%c0_43, %c0_44] : memref<32x32xf32, #tpu.memory_space<vmem>>, vector<32x32xf32>
    %c0_45 = arith.constant 0 : index
    %c0_46 = arith.constant 0 : index
    %36 = vector.load %arg13[%c0_45, %c0_46] : memref<32x128xf32, #tpu.memory_space<vmem>>, vector<32x128xf32>
    %cst = arith.constant dense<0.000000e+00> : vector<32x128xf32>
    %37 = tpu.matmul %35, %36, %cst {dimension_numbers = #tpu.dot_dimension_numbers<[1], [0], [0], [1], [0, 0, 1, 1], [], []>} : vector<32x32xf32>, vector<32x128xf32>, vector<32x128xf32> -> vector<32x128xf32>
    %38 = vector.extract_strided_slice %37 {offsets = [0, 0], sizes = [16, 128], strides = [1, 1]} : vector<32x128xf32> to vector<16x128xf32>
    %c0_47 = arith.constant 0 : index
    %c0_48 = arith.constant 0 : index
    %39 = vector.load %arg14[%c0_47, %c0_48] : memref<16x256xf32, #tpu.memory_space<vmem>>, vector<16x128xf32>
    tpu.vector_store %arg14[%c0_47, %c0_48], %38 {strides = array<i32>} : memref<16x256xf32, #tpu.memory_space<vmem>>, vector<16x128xf32>,
    %40 = vector.extract_strided_slice %37 {offsets = [16, 0], sizes = [16, 128], strides = [1, 1]} : vector<32x128xf32> to vector<16x128xf32>
    %c0_49 = arith.constant 0 : index
    %c128 = arith.constant 128 : index
    %41 = vector.load %arg14[%c0_49, %c128] : memref<16x256xf32, #tpu.memory_space<vmem>>, vector<16x128xf32>
    tpu.vector_store %arg14[%c0_49, %c128], %40 {strides = array<i32>} : memref<16x256xf32, #tpu.memory_space<vmem>>, vector<16x128xf32>,
    %c0_50 = arith.constant 0 : index
    %c0_51 = arith.constant 0 : index
    %42 = vector.load %arg14[%c0_50, %c0_51] : memref<16x256xf32, #tpu.memory_space<vmem>>, vector<16x256xf32>
    %c0_52 = arith.constant 0 : index
    %c0_53 = arith.constant 0 : index
    %43 = vector.load %arg7[%c0_52, %c0_53] : memref<256x256xf32, #tpu.memory_space<vmem>>, vector<256x256xf32>
    %cst_54 = arith.constant dense<0.000000e+00> : vector<16x256xf32>
    %44 = tpu.matmul %42, %43, %cst_54 {dimension_numbers = #tpu.dot_dimension_numbers<[1], [0], [0], [1], [0, 0, 1, 1], [], []>} : vector<16x256xf32>, vector<256x256xf32>, vector<16x256xf32> -> vector<16x256xf32>
    %45 = vector.extract_strided_slice %44 {offsets = [0, 0], sizes = [16, 128], strides = [1, 1]} : vector<16x256xf32> to vector<16x128xf32>
    %46 = vector.extract_strided_slice %44 {offsets = [0, 128], sizes = [16, 128], strides = [1, 1]} : vector<16x256xf32> to vector<16x128xf32>
    %c0_55 = arith.constant 0 : index
    %c0_56 = arith.constant 0 : index
    %47 = vector.load %arg9[%c0_55, %c0_56] : memref<16x128xf32, #tpu.memory_space<vmem>>, vector<16x128xf32>
    tpu.vector_store %arg9[%c0_55, %c0_56], %45 {strides = array<i32>} : memref<16x128xf32, #tpu.memory_space<vmem>>, vector<16x128xf32>,
    %c0_57 = arith.constant 0 : index
    %c0_58 = arith.constant 0 : index
    %48 = vector.load %arg10[%c0_57, %c0_58] : memref<16x128xf32, #tpu.memory_space<vmem>>, vector<16x128xf32>
    tpu.vector_store %arg10[%c0_57, %c0_58], %46 {strides = array<i32>} : memref<16x128xf32, #tpu.memory_space<vmem>>, vector<16x128xf32>,
    %c2_i32 = arith.constant 2 : i32
    %49 = arith.cmpi eq, %arg1, %c2_i32 : i32
    %50 = arith.extui %49 : i1 to i32
    %c0_i32_59 = arith.constant 0 : i32
    %51 = arith.cmpi ne, %50, %c0_i32_59 : i32
    scf.if %51 {
      %52 = arith.mulf %45, %45 : vector<16x128xf32>
      %53 = arith.mulf %46, %46 : vector<16x128xf32>
      %54 = arith.addf %52, %53 : vector<16x128xf32>
      %c0_60 = arith.constant 0 : index
      %c0_61 = arith.constant 0 : index
      %55 = vector.load %arg8[%c0_60, %c0_61] : memref<16x128xf32, #tpu.memory_space<vmem>>, vector<16x128xf32>
      tpu.vector_store %arg8[%c0_60, %c0_61], %54 {strides = array<i32>} : memref<16x128xf32, #tpu.memory_space<vmem>>, vector<16x128xf32>,
    } else {
    }
    return
  }
  func.func @transform_0(%arg0: i32, %arg1: i32) -> (i32, i32) {
    %c0_i32 = arith.constant 0 : i32
    %c0_i32_0 = arith.constant 0 : i32
    return %c0_i32, %arg0 : i32, i32
  }
  func.func @transform_1(%arg0: i32, %arg1: i32) -> (i32, i32) {
    %c0_i32 = arith.constant 0 : i32
    %c0_i32_0 = arith.constant 0 : i32
    return %c0_i32, %arg0 : i32, i32
  }
  func.func @transform_2(%arg0: i32, %arg1: i32) -> (i32, i32, i32) {
    %c0_i32 = arith.constant 0 : i32
    %c0_i32_0 = arith.constant 0 : i32
    %c0_i32_1 = arith.constant 0 : i32
    return %arg1, %c0_i32, %c0_i32_0 : i32, i32, i32
  }
  func.func @transform_3(%arg0: i32, %arg1: i32) -> (i32, i32, i32) {
    %c0_i32 = arith.constant 0 : i32
    %c0_i32_0 = arith.constant 0 : i32
    %c0_i32_1 = arith.constant 0 : i32
    return %arg1, %c0_i32, %c0_i32_0 : i32, i32, i32
  }
  func.func @transform_4(%arg0: i32, %arg1: i32) -> (i32, i32) {
    %c0_i32 = arith.constant 0 : i32
    %c0_i32_0 = arith.constant 0 : i32
    %c0_i32_1 = arith.constant 0 : i32
    return %c0_i32, %c0_i32_0 : i32, i32
  }
  func.func @transform_5(%arg0: i32, %arg1: i32) -> (i32, i32) {
    %c0_i32 = arith.constant 0 : i32
    %c0_i32_0 = arith.constant 0 : i32
    %c0_i32_1 = arith.constant 0 : i32
    return %c0_i32, %c0_i32_0 : i32, i32
  }
  func.func @transform_6(%arg0: i32, %arg1: i32) -> (i32, i32) {
    %c0_i32 = arith.constant 0 : i32
    %c0_i32_0 = arith.constant 0 : i32
    return %c0_i32, %arg0 : i32, i32
  }
}

</mosaic_0001>

<bundles_post_ra>
// kernel: tpu_custom_call.1
= control target key start
LH: loop header
LB: loop body
LE: loop exit
PB: predicated region body
PF: predicated region fallthrough
CT: control target
= control target key end

     0   :  { %s1624_s0 = inlined_call_operand.hbm [shape: f32[16,128], index: 0, kind: input, shape index: {}]   ;;  %s1625_s1 = inlined_call_operand.hbm [shape: f32[16,128], index: 1, kind: input, shape index: {}]   ;;  %s1626_s2 = inlined_call_operand.hbm [shape: f32[3,16,16], index: 2, kind: input, shape index: {}]   ;;  %s1627_s3 = inlined_call_operand.hbm [shape: f32[3,16,16], index: 3, kind: input, shape index: {}]   ;;  %s1628_s4 = inlined_call_operand.hbm [shape: f32[32,32], index: 4, kind: input, shape index: {}]   ;;  %s1629_s5 = inlined_call_operand.hbm [shape: f32[256,256], index: 5, kind: input, shape index: {}]   ;;  %s1630_s6 = inlined_call_operand.hbm [shape: f32[16,128], index: 6, kind: output, shape index: {}]  }
   0x1   :  { %1636 = sst [smem:[#allocation26_spill]] %s1624_s0 }
   0x2   :  { %1637 = sst [smem:[#allocation27_spill]] %s1625_s1 }
   0x3   :  { %1638 = sst [smem:[#allocation28_spill]] %s1626_s2 }
   0x4   :  { %1639 = sst [smem:[#allocation29_spill]] %s1628_s4 }
   0x5   :  { %1640 = sst [smem:[#allocation30_spill]] %s1629_s5 }
   0x6   :  { %11 = vsyncpa [#allocation9], 0 }
   0x7   :  { %12 = vsyncpa [#allocation12], 0 }
   0x8   :  { %13 = vsyncpa [#allocation17], 0 }
   0x9   :  { %14 = vsyncpa [#allocation10], 0  ;;  %s1414_s21 = smov 0   ;;  %s1416_s22 = smov 0  }
   0xa   :  { %s1418_s23 = smov 0   ;;  %s1420_s24 = smov 0  }
   0xb   :  { %s1422_s25 = smov 0   ;;  %s1424_s26 = smov 0  }
   0xc LB: > { %s1443_s27 = sadd.s32 4294967295, %s1359_s26   ;;  %p104_p0 = scmp.ne.s32.totalorder %s1343_s22, %s1339_s21  ;;  %s1359_s26 = sphi %s1424_s26, %s20_s26   ;;  %s1355_s25 = sphi %s1422_s25, %s1659_s25   ;;  %s1351_s24 = sphi %s1420_s24, %s1658_s24   ;;  %s1347_s23 = sphi %s1418_s23, %s1657_s23   ;;  %s1343_s22 = sphi %s1416_s22, %s1656_s22   ;;  %s1339_s21 = sphi %s1414_s21, %s1655_s21  }
   0xd   : > { %p105_p1 = scmp.eq.s32.totalorder %s1443_s27, 0  ;;  %p929_p2 = scmp.ge.s32.totalorder %s1359_s26, 1 }
   0xe   : > { %p209_p3 = scmp.lt.s32.totalorder %s1359_s26, 4  ;;  %s1642_s0 = sld [smem:[#allocation26_spill]] }
   0xf   : > { %p1451_p4 = por %p105_p1, %p104_p0  ;;  %s1361_s9 = smov [#allocation8]  }
  0x10   : > { %p1458_p5 = pnand %p929_p2, %p209_p3  ;;  %s224_s10 = sshll.u32 %s1361_s9, 4  ;;  %s225_s10 = int_to_ptr.vmem [resolvable:$true] %s224_s10 }
  0x11   : > { %s1645_s1 = sld [smem:[#allocation27_spill]]  ;;  %s1631_s15 = smov 128  }
  0x12   : > { %p984_p6 = pneg %p1458_p5  ;;  %s1633_s16 = smov 8  }
  0x13   : > { %s1364_s17 = smov [#allocation11]   ;;  %s29_s19 = sadd.s32 1, %s1355_s25 }
  0x14   : > { %s222_s7 = sshll.u32 %s1642_s0, 4  ;;  %p1466_p7 = pnand %p984_p6, %p105_p1  ;;  %s223_s7 = int_to_ptr.hbm [resolvable:$true] %s222_s7 }
  0x15   : > { %s240_s18 = sshll.u32 %s1364_s17, 4  ;;  %s91_s20 = sadd.s32 1, %s1347_s23  ;;  %s241_s18 = int_to_ptr.vmem [resolvable:$true] %s240_s18 }
  0x16   : > { %987 = dma.hbm_to_vmem [thread:$0]  (!%p1466_p7), %s223_s7, 256, %s225_s10, [#allocation9], %s1631_s15, %s1631_s15, %s1633_s16  }
  0x17   : > { %s238_s14 = sshll.u32 %s1645_s1, 4  ;;  %p30_p8 = scmp.ge.s32.totalorder %s29_s19, 3  ;;  %s239_s14 = int_to_ptr.hbm [resolvable:$true] %s238_s14 }
  0x18   : > { %990 = dma.hbm_to_vmem [thread:$0]  (!%p1466_p7), %s239_s14, 256, %s241_s18, [#allocation12], %s1631_s15, %s1631_s15, %s1633_s16  }
  0x19   : > { %p98_p9 = scmp.ne.s32.totalorder %s1347_s23, %s1343_s22  ;;  %p99_p10 = scmp.eq.s32.totalorder %s1359_s26, 0 }
  0x1a   : > { %p1008_p11 = scmp.lt.s32.totalorder %s1359_s26, 3  ;;  %s1661_s19 = smov (%p30_p8, %s29_s19), 0 }
  0x1b   : > { %1646 = sst [smem:[#allocation25_spill]] %s1661_s19  ;;  %p1491_p12 = por %p99_p10, %p98_p9 }
  0x1c   : > { %s282_s29 = sand.u32 1, %s1359_s26   ;;  %s88_s30 = ssub.s32 %s1355_s25, %s1661_s19 }
  0x1d   : > { %p89_p13 = scmp.eq.s32.totalorder %s88_s30, 0  ;;  %s284_s7 = sand.u32 1, %s1347_s23  }
  0x1e   : > { %s1499_s9 = sshll.u32 %s284_s7, 4  ;;  %s958_s10 = sshll.u32 %s1355_s25, 4 }
  0x1f   : > { %s1503_s12 = scalar_select %p89_p13, %s1347_s23, %s91_s20  }
  0x20   : > { %s1648_s2 = sld [smem:[#allocation28_spill]]  ;;  %s286_s15 = scalar_lea.vmem [#allocation13], %s1499_s9 }
  0x21   : > { %s294_s16 = sshll.u32 %s286_s15, 4  ;;  %p1513_p0 = pnand %p1008_p11, %p1491_p12  ;;  %s295_s16 = int_to_ptr.vmem [resolvable:$true] %s294_s16 }
  0x22   : > { %s1650_s4 = sld [smem:[#allocation29_spill]]  ;;  %s1365_s13 = smov [#allocation15]  }
  0x23   : > { %s254_s14 = sshll.u32 %s1365_s13, 4  ;;  %s1651_s15 = smov 8   ;;  %s255_s14 = int_to_ptr.vmem [resolvable:$true] %s254_s14 }
  0x24   : > { %s1652_s1 = smov 128   ;;  %s1653_s5 = sld [smem:[#allocation30_spill]] }
  0x25   : > { %s1366_s0 = smov [#allocation16]   ;;  %s1368_s13 = smov 16  }
  0x26   : > { %s291_s17 = scalar_lea.hbm %s1648_s2, %s958_s10  ;;  %s268_s7 = sshll.u32 %s1366_s0, 4  ;;  %s269_s7 = int_to_ptr.vmem [resolvable:$true] %s268_s7 }
  0x27   : > { %s292_s18 = sshll.u32 %s291_s17, 4  ;;  %s283_s17 = scalar_lea.sflag [#allocation9], %s282_s29  ;;  %s293_s18 = int_to_ptr.hbm [resolvable:$true] %s292_s18 }
  0x28   : > { %s252_s20 = sshll.u32 %s1650_s4, 4  ;;  %s1367_s29 = smov 256   ;;  %s253_s20 = int_to_ptr.hbm [resolvable:$true] %s252_s20 }
  0x29   : > { %1000 = dma.hbm_to_vmem [thread:$0]  (!%p1513_p0), %s293_s18, 256, %s295_s16, %s283_s17, %s1652_s1, %s1652_s1, %s1651_s15  }
  0x2a   : > { %s266_s19 = sshll.u32 %s1653_s5, 4  ;;  %s313_s4 = scalar_lea.hbm %s1627_s3, %s958_s10  ;;  %s267_s19 = int_to_ptr.hbm [resolvable:$true] %s266_s19 }
  0x2b   : > { %993 = dma.hbm_to_vmem [thread:$0]  (!%p1466_p7), %s253_s20, 512, %s255_s14, [#allocation12], %s1652_s1, %s1652_s1, %s1651_s15  }
  0x2c   : > { %996 = dma.hbm_to_vmem [thread:$0]  (!%p1466_p7), %s267_s19, 8192, %s269_s7, [#allocation17], %s1367_s29, %s1367_s29, %s1368_s13  }
  0x2d   : > { %s314_s2 = sshll.u32 %s313_s4, 4  ;;  %s308_s21 = scalar_lea.vmem [#allocation14], %s1499_s9  ;;  %s315_s2 = int_to_ptr.hbm [resolvable:$true] %s314_s2 }
  0x2e   : > { %s316_s5 = sshll.u32 %s308_s21, 4  ;;  %328 = sbr.rel (%p1458_p5) target bundleno = 576 (0x240), region = 44  ;;  %s317_s5 = int_to_ptr.vmem [resolvable:$true] %s316_s5 }
  0x2f   : > { %1003 = dma.hbm_to_vmem [thread:$0]  (!%p1513_p0), %s315_s2, 256, %s317_s5, %s283_s17, %s1652_s1, %s1652_s1, %s1651_s15  }
  0x33   : > { %1314 = dma.done.wait (%p105_p1), [#allocation9], 256  }
  0x34   : > { %1316 = vsyncadd (%p105_p1), [#allocation9], 4294967040 }
  0x35   : > { %1318 = dma.done.wait (%p105_p1), [#allocation12], 256  }
  0x36   : > { %1320 = vsyncadd (%p105_p1), [#allocation12], 4294967040  ;;  %s340_s4 = sand.u32 1, %s1443_s27   ;;  %s342_s1 = sand.u32 1, %s1343_s22  }
  0x37   : > { %s1556_s5 = sshll.u32 %s342_s1, 4  ;;  %s341_s8 = scalar_lea.sflag [#allocation9], %s340_s4 }
  0x38   : > { %s344_s11 = scalar_lea.vmem [#allocation13], %s1556_s5 }
  0x39   : > { %1322 = dma.done.wait (%p1451_p4), %s341_s8, 512  }
  0x3a   : > { %1324 = vsyncadd (%p1451_p4), %s341_s8, 4294966784  ;;  %s354_s19 = scalar_lea.vmem [#allocation14], %s1556_s5 }
  0x3b   : > { %1326 = dma.done.wait (%p105_p1), [#allocation12], 512  }
  0x3c   : > { %1328 = vsyncadd (%p105_p1), [#allocation12], 4294966784 }
  0x3d   : > { %1330 = dma.done.wait (%p105_p1), [#allocation17], 8192  }
  0x3e   : > { %1332 = vsyncadd (%p105_p1), [#allocation17], 4294959104  ;;  %p948_p2 = scmp.ne.s32.totalorder %s1351_s24, 0 }
  0x40   : > { %397 = sbr.rel (%p948_p2) target bundleno = 74 (0x4a), region = 72 }
  0x45   : > { %v398_v0 = vld [vmem:[#allocation8] sm:$0xff]  ;;  %v399_v1 = vld [vmem:[#allocation8 + $0x8] sm:$0xff]  ;;  %v402_v2 = vld [vmem:[#allocation11] sm:$0xff] }
  0x46   : > { %400 = vst [vmem:[#allocation2] sm:$0xff] %v398_v0  ;;  %v403_v3 = vld [vmem:[#allocation11 + $0x8] sm:$0xff] }
  0x47   : > { %401 = vst [vmem:[#allocation2 + $0x8] sm:$0xff] %v399_v1 }
  0x48   : > { %404 = vst [vmem:[#allocation3 + $0x8] sm:$0xff] %v402_v2 }
  0x49   : > { %405 = vst [vmem:[#allocation3] sm:$0xff] %v403_v3 }
  0x4a PF: > { %v407_v4 = vld [vmem:[%s344_s11 + $0x8] sm:$0xff]  ;;  %s1369_s28 = smov 16   ;;  %s1370_s9 = smov 32   ;;  %v406_v5 = vld [vmem:[%s344_s11] sm:$0xff]  ;;  %vm410_vm0 = vcmask 130048   ;;  %vm423_vm1 = vcmask 261248  }
  0x4b   : > { %419 = vrot.lane.b32.xlu0 %v407_v4, %s1369_s28  ;;  %438 = vrot.lane.b32.xlu1 %v407_v4, %s1370_s9  ;;  %v409_v6 = vld [vmem:[%s354_s19 + $0x8] sm:$0xff]  ;;  %v408_v7 = vld [vmem:[%s354_s19] sm:$0xff]  ;;  %s1371_s10 = smov 48   ;;  %s1372_s30 = smov 64   ;;  %412 = vst.msk [vmem:[#allocation4 + $0x8] sm:$0xff] %vm410_vm0, %v407_v4  ;;  %vm442_vm2 = vcmask 392448  }
  0x4c   : > { %417 = vrot.lane.b32.xlu2 %v406_v5, %s1369_s28  ;;  %s1373_s20 = smov 80   ;;  %411 = vst.msk [vmem:[#allocation4] sm:$0xff] %vm410_vm0, %v406_v5  ;;  %s1374_s14 = smov 96   ;;  %vm459_vm3 = vcmask 523648   ;;  %vm476_vm4 = vcmask 654848   ;;  %vm493_vm5 = vcmask 786048  }
  0x4d   : > { %413 = vst.msk [vmem:[#allocation5] sm:$0xff] %vm410_vm0, %v408_v7  ;;  %s1375_s17 = smov 112   ;;  %vm510_vm6 = vcmask 917248   ;;  %vm527_vm7 = vcmask 1048448   ;;  %v538_v45 = vld [vmem:[#allocation2] sm:$0xff]  ;;  %v650_v51 = vld [vmem:[#allocation16 + $0xf0] sm:$0xff] }
  0x4e   : > { %414 = vst.msk [vmem:[#allocation5 + $0x8] sm:$0xff] %vm410_vm0, %v409_v6  ;;  %v539_v32 = vld [vmem:[#allocation2 + $0x8] sm:$0xff]  ;;  %v651_v52 = vld [vmem:[#allocation16 + $0xf8] sm:$0xff]  ;;  %v648_v53 = vld [vmem:[#allocation16 + $0xe0] sm:$0xff]  ;;  %684 = vmatpush.msra.mxu1 %v650_v51  ;;  %vm570_vm8 = vcmask 261120   ;;  %p953_p1 = scmp.ne.s32.totalorder %s1351_s24, 2 }
  0x4f   : > { %v540_v43 = vld [vmem:[#allocation3 + $0x8] sm:$0xff]  ;;  %730 = vmatpush.msra.mxu3 %v651_v52  ;;  %v649_v57 = vld [vmem:[#allocation16 + $0xe8] sm:$0xff]  ;;  %v646_v58 = vld [vmem:[#allocation16 + $0xd0] sm:$0xff] }
  0x50   : > { %v541_v35 = vld [vmem:[#allocation3] sm:$0xff]  ;;  %685 = vmatpush.msra.mxu1 %v648_v53  ;;  %v647_v60 = vld [vmem:[#allocation16 + $0xd8] sm:$0xff]  ;;  %v644_v61 = vld [vmem:[#allocation16 + $0xc0] sm:$0xff] }
  0x51   : > { %731 = vmatpush.msra.mxu3 %v649_v57  ;;  %v562_v63 = vld [vmem:[#allocation15] sm:$0xff]  ;;  %v645_v0 = vld [vmem:[#allocation16 + $0xc8] sm:$0xff]  ;;  %v682_v1 = vld [vmem:[#allocation16 + $0x1f0] sm:$0xff] }
  0x52   : > { %686 = vmatpush.msra.mxu1 %v646_v58  ;;  %v642_v2 = vld [vmem:[#allocation16 + $0xb0] sm:$0xff]  ;;  %707 = vmatpush.msra.mxu2 %v682_v1  ;;  %v683_v3 = vld [vmem:[#allocation16 + $0x1f8] sm:$0xff]  ;;  %v661_v51 = vld [vmem:[#allocation16 + $0x148] sm:$0xff] }
  0x53   : > { %430 = vrot.lane.b32.xlu0 %v409_v6, %s1369_s28  ;;  %447 = vrot.lane.b32.xlu1 %v409_v6, %s1370_s9  ;;  %v658_v52 = vld [vmem:[#allocation16 + $0x130] sm:$0xff]  ;;  %v659_v53 = vld [vmem:[#allocation16 + $0x138] sm:$0xff]  ;;  %v652_v58 = vld [vmem:[#allocation16 + $0x100] sm:$0xff] }
  0x54   : > { %428 = vrot.lane.b32.xlu2 %v408_v7, %s1369_s28  ;;  %732 = vmatpush.msra.mxu3 %v647_v60  ;;  %v655_v57 = vld [vmem:[#allocation16 + $0x118] sm:$0xff] }
  0x55   : > { %687 = vmatpush.msra.mxu1 %v644_v61 }
  0x56   : > { %733 = vmatpush.msra.mxu3 %v645_v0 }
  0x57   : > { %688 = vmatpush.msra.mxu1 %v642_v2 }
  0x5b   : > { %455 = vrot.lane.b32.xlu0 %v407_v4, %s1371_s10  ;;  %464 = vrot.lane.b32.xlu1 %v409_v6, %s1371_s10 }
  0x5c   : > { %436 = vrot.lane.b32.xlu2 %v406_v5, %s1370_s9 }
  0x63   : > { %445 = vrot.lane.b32.xlu0 %v408_v7, %s1370_s9  ;;  %472 = vrot.lane.b32.xlu1 %v407_v4, %s1372_s30 }
  0x64   : > { %481 = vrot.lane.b32.xlu2 %v409_v6, %s1372_s30 }
  0x6b   : > { %453 = vrot.lane.b32.xlu0 %v406_v5, %s1371_s10  ;;  %462 = vrot.lane.b32.xlu1 %v408_v7, %s1371_s10 }
  0x6c   : > { %489 = vrot.lane.b32.xlu2 %v407_v4, %s1373_s20 }
  0x73   : > { %498 = vrot.lane.b32.xlu0 %v409_v6, %s1373_s20  ;;  %470 = vrot.lane.b32.xlu1 %v406_v5, %s1372_s30 }
  0x74   : > { %479 = vrot.lane.b32.xlu2 %v408_v7, %s1372_s30 }
  0x7b   : > { %506 = vrot.lane.b32.xlu0 %v407_v4, %s1374_s14  ;;  %515 = vrot.lane.b32.xlu1 %v409_v6, %s1374_s14 }
  0x7c   : > { %487 = vrot.lane.b32.xlu2 %v406_v5, %s1373_s20 }
  0x83   : > { %496 = vrot.lane.b32.xlu0 %v408_v7, %s1373_s20  ;;  %523 = vrot.lane.b32.xlu1 %v407_v4, %s1375_s17  ;;  %v643_v4 = vld [vmem:[#allocation16 + $0xb8] sm:$0xff] }
  0x84   : > { %532 = vrot.lane.b32.xlu2 %v409_v6, %s1375_s17  ;;  %v640_v6 = vld [vmem:[#allocation16 + $0xa0] sm:$0xff]  ;;  %734 = vmatpush.msra.mxu3 %v643_v4 }
  0x85   : > { %689 = vmatpush.msra.mxu1 %v640_v6 }
  0x8b   : > { %504 = vrot.lane.b32.xlu0 %v406_v5, %s1374_s14  ;;  %513 = vrot.lane.b32.xlu1 %v408_v7, %s1374_s14 }
  0x8c   : > { %521 = vrot.lane.b32.xlu2 %v406_v5, %s1375_s17  ;;  %v680_v5 = vld [vmem:[#allocation16 + $0x1e0] sm:$0xff] }
  0x8d   : > { %708 = vmatpush.msra.mxu2 %v680_v5 }
  0x93   : > { %530 = vrot.lane.b32.xlu0 %v408_v7, %s1375_s17  ;;  %v681_v7 = vld [vmem:[#allocation16 + $0x1e8] sm:$0xff] }
  0xa6   : > { %v418_v8 = vpop.permute.xlu2 %417 }
  0xa7   : > { %424 = vst.msk [vmem:[#allocation4] sm:$0xff] %vm423_vm1, %v418_v8  ;;  %v641_v8 = vld [vmem:[#allocation16 + $0xa8] sm:$0xff] }
  0xa8   : > { %735 = vmatpush.msra.mxu3 %v641_v8 }
  0xae   : > { %v429_v9 = vpop.permute.xlu2 %428 }
  0xaf   : > { %434 = vst.msk [vmem:[#allocation5] sm:$0xff] %vm423_vm1, %v429_v9  ;;  %v678_v9 = vld [vmem:[#allocation16 + $0x1d0] sm:$0xff] }
  0xb0   : > { %709 = vmatpush.msra.mxu2 %v678_v9 }
  0xb6   : > { %v437_v10 = vpop.permute.xlu2 %436 }
  0xb7   : > { %443 = vst.msk [vmem:[#allocation4] sm:$0xff] %vm442_vm2, %v437_v10  ;;  %v638_v10 = vld [vmem:[#allocation16 + $0x90] sm:$0xff] }
  0xb8   : > { %690 = vmatpush.msra.mxu1 %v638_v10 }
  0xbd   : > { %v420_v11 = vpop.permute.xlu0 %419  ;;  %v439_v12 = vpop.permute.xlu1 %438 }
  0xbe   : > { %425 = vst.msk [vmem:[#allocation4 + $0x8] sm:$0xff] %vm423_vm1, %v420_v11  ;;  %v482_v13 = vpop.permute.xlu2 %481  ;;  %v679_v11 = vld [vmem:[#allocation16 + $0x1d8] sm:$0xff] }
  0xbf   : > { %444 = vst.msk [vmem:[#allocation4 + $0x8] sm:$0xff] %vm442_vm2, %v439_v12  ;;  %v639_v12 = vld [vmem:[#allocation16 + $0x98] sm:$0xff] }
  0xc0   : > { %736 = vmatpush.msra.mxu3 %v639_v12 }
  0xc5   : > { %v431_v14 = vpop.permute.xlu0 %430  ;;  %v448_v15 = vpop.permute.xlu1 %447 }
  0xc6   : > { %435 = vst.msk [vmem:[#allocation5 + $0x8] sm:$0xff] %vm423_vm1, %v431_v14  ;;  %v490_v18 = vpop.permute.xlu2 %489  ;;  %v636_v14 = vld [vmem:[#allocation16 + $0x80] sm:$0xff] }
  0xc7   : > { %452 = vst.msk [vmem:[#allocation5 + $0x8] sm:$0xff] %vm442_vm2, %v448_v15  ;;  %v677_v15 = vld [vmem:[#allocation16 + $0x1c8] sm:$0xff]  ;;  %691 = vmatpush.msra.mxu1 %v636_v14 }
  0xcd   : > { %v456_v16 = vpop.permute.xlu0 %455  ;;  %v465_v17 = vpop.permute.xlu1 %464 }
  0xce   : > { %461 = vst.msk [vmem:[#allocation4 + $0x8] sm:$0xff] %vm459_vm3, %v456_v16  ;;  %v480_v21 = vpop.permute.xlu2 %479  ;;  %v563_v16 = vld [vmem:[#allocation15 + $0x8] sm:$0xff] }
  0xcf   : > { %469 = vst.msk [vmem:[#allocation5 + $0x8] sm:$0xff] %vm459_vm3, %v465_v17  ;;  %v637_v17 = vld [vmem:[#allocation16 + $0x88] sm:$0xff] }
  0xd0   : > { %486 = vst.msk [vmem:[#allocation5 + $0x8] sm:$0xff] %vm476_vm4, %v482_v13  ;;  %v676_v13 = vld [vmem:[#allocation16 + $0x1c0] sm:$0xff]  ;;  %737 = vmatpush.msra.mxu3 %v637_v17 }
  0xd1   : > { %710 = vmatpush.msra.mxu2 %v676_v13 }
  0xd5   : > { %v446_v19 = vpop.permute.xlu0 %445  ;;  %v473_v20 = vpop.permute.xlu1 %472 }
  0xd6   : > { %451 = vst.msk [vmem:[#allocation5] sm:$0xff] %vm442_vm2, %v446_v19  ;;  %v488_v24 = vpop.permute.xlu2 %487  ;;  %v674_v19 = vld [vmem:[#allocation16 + $0x1b0] sm:$0xff] }
  0xd7   : > { %478 = vst.msk [vmem:[#allocation4 + $0x8] sm:$0xff] %vm476_vm4, %v473_v20  ;;  %v635_v20 = vld [vmem:[#allocation16 + $0x78] sm:$0xff]  ;;  %711 = vmatpush.msra.mxu2 %v674_v19 }
  0xd8   : > { %495 = vst.msk [vmem:[#allocation4 + $0x8] sm:$0xff] %vm493_vm5, %v490_v18  ;;  %v634_v18 = vld [vmem:[#allocation16 + $0x70] sm:$0xff]  ;;  %738 = vmatpush.msra.mxu3 %v635_v20 }
  0xd9   : > { %692 = vmatpush.msra.mxu1 %v634_v18 }
  0xdd   : > { %v454_v22 = vpop.permute.xlu0 %453  ;;  %v463_v23 = vpop.permute.xlu1 %462 }
  0xde   : > { %460 = vst.msk [vmem:[#allocation4] sm:$0xff] %vm459_vm3, %v454_v22  ;;  %v533_v27 = vpop.permute.xlu2 %532  ;;  %v632_v22 = vld [vmem:[#allocation16 + $0x60] sm:$0xff] }
  0xdf   : > { %468 = vst.msk [vmem:[#allocation5] sm:$0xff] %vm459_vm3, %v463_v23  ;;  %v672_v23 = vld [vmem:[#allocation16 + $0x1a0] sm:$0xff]  ;;  %693 = vmatpush.msra.mxu1 %v632_v22 }
  0xe0   : > { %485 = vst.msk [vmem:[#allocation5] sm:$0xff] %vm476_vm4, %v480_v21  ;;  %v675_v21 = vld [vmem:[#allocation16 + $0x1b8] sm:$0xff]  ;;  %712 = vmatpush.msra.mxu2 %v672_v23 }
  0xe5   : > { %v499_v25 = vpop.permute.xlu0 %498  ;;  %v471_v26 = vpop.permute.xlu1 %470 }
  0xe6   : > { %503 = vst.msk [vmem:[#allocation5 + $0x8] sm:$0xff] %vm493_vm5, %v499_v25  ;;  %v522_v34 = vpop.permute.xlu2 %521  ;;  %v673_v25 = vld [vmem:[#allocation16 + $0x1a8] sm:$0xff] }
  0xe7   : > { %477 = vst.msk [vmem:[#allocation4] sm:$0xff] %vm476_vm4, %v471_v26  ;;  %v630_v26 = vld [vmem:[#allocation16 + $0x50] sm:$0xff] }
  0xe8   : > { %494 = vst.msk [vmem:[#allocation4] sm:$0xff] %vm493_vm5, %v488_v24  ;;  %v633_v24 = vld [vmem:[#allocation16 + $0x68] sm:$0xff]  ;;  %694 = vmatpush.msra.mxu1 %v630_v26 }
  0xe9   : > { %739 = vmatpush.msra.mxu3 %v633_v24 }
  0xed   : > { %v507_v28 = vpop.permute.xlu0 %506  ;;  %v516_v29 = vpop.permute.xlu1 %515 }
  0xee   : > { %512 = vst.msk [vmem:[#allocation4 + $0x8] sm:$0xff] %vm510_vm6, %v507_v28  ;;  %v631_v28 = vld [vmem:[#allocation16 + $0x58] sm:$0xff] }
  0xef   : > { %520 = vst.msk [vmem:[#allocation5 + $0x8] sm:$0xff] %vm510_vm6, %v516_v29  ;;  %v671_v29 = vld [vmem:[#allocation16 + $0x198] sm:$0xff]  ;;  %740 = vmatpush.msra.mxu3 %v631_v28 }
  0xf0   : > { %537 = vst.msk [vmem:[#allocation5 + $0x8] sm:$0xff] %vm527_vm7, %v533_v27  ;;  %v670_v27 = vld [vmem:[#allocation16 + $0x190] sm:$0xff] }
  0xf1   : > { %713 = vmatpush.msra.mxu2 %v670_v27 }
  0xf5   : > { %v497_v30 = vpop.permute.xlu0 %496  ;;  %v524_v31 = vpop.permute.xlu1 %523 }
  0xf6   : > { %502 = vst.msk [vmem:[#allocation5] sm:$0xff] %vm493_vm5, %v497_v30  ;;  %v628_v30 = vld [vmem:[#allocation16 + $0x40] sm:$0xff] }
  0xf7   : > { %529 = vst.msk [vmem:[#allocation4 + $0x8] sm:$0xff] %vm527_vm7, %v524_v31  ;;  %v545_v33 = vld [vmem:[#allocation5 + $0x8] sm:$0xff]  ;;  %v564_v31 = vld [vmem:[#allocation15 + $0x10] sm:$0xff]  ;;  %695 = vmatpush.msra.mxu1 %v628_v30 }
  0xf8   : > { %v555_v38 = vmul.f32 %v545_v33, %v539_v32  ;;  %v549_v50 = vmul.f32 %v545_v33, %v541_v35  ;;  %v626_v33 = vld [vmem:[#allocation16 + $0x30] sm:$0xff] }
  0xf9   : > { %696 = vmatpush.msra.mxu1 %v626_v33 }
  0xfd   : > { %v505_v36 = vpop.permute.xlu0 %504  ;;  %v514_v37 = vpop.permute.xlu1 %513 }
  0xfe   : > { %511 = vst.msk [vmem:[#allocation4] sm:$0xff] %vm510_vm6, %v505_v36  ;;  %v543_v39 = vld [vmem:[#allocation4 + $0x8] sm:$0xff] }
  0xff   : > { %519 = vst.msk [vmem:[#allocation5] sm:$0xff] %vm510_vm6, %v514_v37  ;;  %v557_v40 = vmul.f32 %v543_v39, %v541_v35  ;;  %v547_v49 = vmul.f32 %v543_v39, %v539_v32  ;;  %v629_v32 = vld [vmem:[#allocation16 + $0x48] sm:$0xff]  ;;  %v624_v35 = vld [vmem:[#allocation16 + $0x20] sm:$0xff]  ;;  %v622_v37 = vld [vmem:[#allocation16 + $0x10] sm:$0xff] }
 0x100   : > { %528 = vst.msk [vmem:[#allocation4] sm:$0xff] %vm527_vm7, %v522_v34  ;;  %v627_v34 = vld [vmem:[#allocation16 + $0x38] sm:$0xff]  ;;  %741 = vmatpush.msra.mxu3 %v629_v32  ;;  %v625_v36 = vld [vmem:[#allocation16 + $0x28] sm:$0xff]  ;;  %697 = vmatpush.msra.mxu1 %v624_v35 }
 0x101   : > { %v559_v41 = vadd.f32 %v557_v40, %v555_v38  ;;  %v551_v59 = vsub.f32 %v547_v49, %v549_v50  ;;  %v623_v38 = vld [vmem:[#allocation16 + $0x18] sm:$0xff]  ;;  %v620_v40 = vld [vmem:[#allocation16] sm:$0xff] }
 0x102   : > { %742 = vmatpush.msra.mxu3 %v627_v34  ;;  %v565_v39 = vld [vmem:[#allocation15 + $0x18] sm:$0xff]  ;;  %698 = vmatpush.msra.mxu1 %v622_v37  ;;  %v660_v50 = vld [vmem:[#allocation16 + $0x140] sm:$0xff] }
 0x103   : > { %595 = vmatpush.msra.mxu0 %v559_v41  ;;  %v668_v41 = vld [vmem:[#allocation16 + $0x180] sm:$0xff]  ;;  %v663_v49 = vld [vmem:[#allocation16 + $0x158] sm:$0xff] }
 0x104   : > { %743 = vmatpush.msra.mxu3 %v625_v36  ;;  %699 = vmatpush.msra.mxu1 %v620_v40 }
 0x105   : > { %v531_v42 = vpop.permute.xlu0 %530  ;;  %714 = vmatpush.msra.mxu2 %v668_v41 }
 0x106   : > { %536 = vst.msk [vmem:[#allocation5] sm:$0xff] %vm527_vm7, %v531_v42  ;;  %744 = vmatpush.msra.mxu3 %v623_v38  ;;  %v621_v42 = vld [vmem:[#allocation16 + $0x8] sm:$0xff] }
 0x107   : > { %v542_v44 = vld [vmem:[#allocation4] sm:$0xff] }
 0x108   : > { %v556_v46 = vmul.f32 %v542_v44, %v540_v43  ;;  %v546_v55 = vmul.f32 %v542_v44, %v538_v45  ;;  %745 = vmatpush.msra.mxu3 %v621_v42  ;;  %v666_v44 = vld [vmem:[#allocation16 + $0x170] sm:$0xff] }
 0x109   : > { %715 = vmatpush.msra.mxu2 %v666_v44 }
 0x10d   : > { %v544_v47 = vld [vmem:[#allocation5] sm:$0xff] }
 0x10e   : > { %v554_v48 = vmul.f32 %v544_v47, %v538_v45  ;;  %v548_v56 = vmul.f32 %v544_v47, %v540_v43  ;;  %v669_v43 = vld [vmem:[#allocation16 + $0x188] sm:$0xff]  ;;  %v667_v45 = vld [vmem:[#allocation16 + $0x178] sm:$0xff] }
 0x10f   : > { %v665_v47 = vld [vmem:[#allocation16 + $0x168] sm:$0xff] }
 0x110   : > { %v558_v54 = vadd.f32 %v556_v46, %v554_v48  ;;  %v550_v62 = vsub.f32 %v546_v55, %v548_v56  ;;  %v664_v46 = vld [vmem:[#allocation16 + $0x160] sm:$0xff]  ;;  %v662_v48 = vld [vmem:[#allocation16 + $0x150] sm:$0xff]  ;;  %v657_v55 = vld [vmem:[#allocation16 + $0x128] sm:$0xff] }
 0x111   : > { %716 = vmatpush.msra.mxu2 %v664_v46  ;;  %v654_v56 = vld [vmem:[#allocation16 + $0x110] sm:$0xff] }
 0x112   : > { %596 = vmatpush.msra.mxu0 %v558_v54  ;;  %v656_v54 = vld [vmem:[#allocation16 + $0x120] sm:$0xff] }
 0x113   : > { %717 = vmatpush.msra.mxu2 %v662_v48 }
 0x114   : > { %597 = vmatpush.msra.mxu0 %v551_v59  ;;  %v653_v59 = vld [vmem:[#allocation16 + $0x108] sm:$0xff] }
 0x115   : > { %718 = vmatpush.msra.mxu2 %v660_v50 }
 0x116   : > { %598 = vmatpush.msra.mxu0 %v550_v62 }
 0x117   : > { %949 = vmatmul.msk.f32.vlgmr.msra.gmra.mxu0 %vm570_vm8, %v562_v63  ;;  %719 = vmatpush.msra.mxu2 %v658_v52 }
 0x118   : > { %753 = vmatpush.msrb.mxu0 %v683_v3 }
 0x119   : > { %720 = vmatpush.msra.mxu2 %v656_v54 }
 0x11a   : > { %754 = vmatpush.msrb.mxu0 %v681_v7 }
 0x11b   : > { %721 = vmatpush.msra.mxu2 %v654_v56 }
 0x11c   : > { %755 = vmatpush.msrb.mxu0 %v679_v11 }
 0x11d   : > { %722 = vmatpush.msra.mxu2 %v652_v58 }
 0x11e   : > { %756 = vmatpush.msrb.mxu0 %v677_v15 }
 0x11f   : > { %950 = vmatmul.msk.f32.gmra.mxu0 %vm570_vm8, %v563_v16 }
 0x120   : > { %757 = vmatpush.msrb.mxu0 %v675_v21 }
 0x122   : > { %758 = vmatpush.msrb.mxu0 %v673_v25 }
 0x124   : > { %759 = vmatpush.msrb.mxu0 %v671_v29 }
 0x126   : > { %760 = vmatpush.msrb.mxu0 %v669_v43 }
 0x127   : > { %951 = vmatmul.msk.f32.gmra.mxu0 %vm570_vm8, %v564_v31 }
 0x128   : > { %761 = vmatpush.msrb.mxu0 %v667_v45 }
 0x12a   : > { %762 = vmatpush.msrb.mxu0 %v665_v47 }
 0x12c   : > { %763 = vmatpush.msrb.mxu0 %v663_v49 }
 0x12e   : > { %764 = vmatpush.msrb.mxu0 %v661_v51 }
 0x12f   : > { %952 = vmatmul.msk.f32.gmra.mxu0 %vm570_vm8, %v565_v39 }
 0x130   : > { %765 = vmatpush.msrb.mxu0 %v659_v53 }
 0x132   : > { %766 = vmatpush.msrb.mxu0 %v657_v55 }
 0x134   : > { %767 = vmatpush.msrb.mxu0 %v655_v57 }
 0x136   : > { %768 = vmatpush.msrb.mxu0 %v653_v59 }
 0x194   : > { %v600_v60 = vpop.f32.mrf.mxu0 }
 0x195   : > { %700 = vmatmul.f32.vlgmr.msra.gmra.mxu1 %v600_v60  ;;  %746 = vmatmul.f32.vlgmr.msra.gmra.mxu3 %v600_v60 }
 0x19c   : > { %v603_v61 = vpop.f32.mrf.mxu0 }
 0x19d   : > { %703 = vmatmul.f32.gmra.mxu1 %v603_v61  ;;  %749 = vmatmul.f32.gmra.mxu3 %v603_v61 }
 0x1a4   : > { %v606_v62 = vpop.f32.mrf.mxu0 }
 0x1a5   : > { %723 = vmatmul.f32.vlgmr.msra.gmra.mxu2 %v606_v62  ;;  %769 = vmatmul.f32.vlgmr.msrb.gmra.mxu0 %v606_v62 }
 0x1ac   : > { %v609_v63 = vpop.f32.mrf.mxu0 }
 0x1ad   : > { %726 = vmatmul.f32.gmra.mxu2 %v609_v63  ;;  %772 = vmatmul.f32.gmra.mxu0 %v609_v63 }
 0x212   : > { %v701_v3 = vpop.f32.mrf.mxu1 }
 0x218   : > { %v747_v0 = vpop.f32.mrf.mxu3 }
 0x21a   : > { %v704_v9 = vpop.f32.mrf.mxu1 }
 0x220   : > { %v750_v6 = vpop.f32.mrf.mxu3 }
 0x222   : > { %v770_v1 = vpop.f32.mrf.mxu0 }
 0x223   : > { %v771_v2 = vadd.f32 %v770_v1, %v747_v0 }
 0x225   : > { %778 = vst [vmem:[#allocation3 + $0x8] sm:$0xff] %v771_v2 }
 0x228   : > { %v724_v4 = vpop.f32.mrf.mxu2 }
 0x229   : > { %v725_v5 = vadd.f32 %v724_v4, %v701_v3 }
 0x22a   : > { %v773_v7 = vpop.f32.mrf.mxu0 }
 0x22b   : > { %776 = vst [vmem:[#allocation2] sm:$0xff] %v725_v5  ;;  %v774_v8 = vadd.f32 %v773_v7, %v750_v6 }
 0x22d   : > { %779 = vst [vmem:[#allocation3] sm:$0xff] %v774_v8 }
 0x22f   : > { %783 = sbr.rel (%p953_p1) target bundleno = 570 (0x23a), region = 76 }
 0x230   : > { %v727_v10 = vpop.f32.mrf.mxu2 }
 0x231   : > { %v728_v11 = vadd.f32 %v727_v10, %v704_v9 }
 0x233   : > { %777 = vst [vmem:[#allocation2 + $0x8] sm:$0xff] %v728_v11 }
 0x234   : > { %v784_v12 = vmul.f32 %v725_v5, %v725_v5  ;;  %v786_v13 = vmul.f32 %v771_v2, %v771_v2  ;;  %v785_v14 = vmul.f32 %v728_v11, %v728_v11  ;;  %v787_v15 = vmul.f32 %v774_v8, %v774_v8 }
 0x236   : > { %v788_v16 = vadd.f32 %v786_v13, %v784_v12  ;;  %v789_v17 = vadd.f32 %v787_v15, %v785_v14 }
 0x238   : > { %790 = vst [vmem:[#allocation18] sm:$0xff] %v788_v16 }
 0x239   : > { %791 = vst [vmem:[#allocation18 + $0x8] sm:$0xff] %v789_v17 }
 0x23a PF: > { %p1013_p3 = scmp.eq.s32.totalorder %s1443_s27, 2  ;;  %s801_s7 = sshll.u32 %s1630_s6, 4  ;;  %s802_s7 = int_to_ptr.hbm [resolvable:$true] %s801_s7 }
 0x23b   : > { %s1376_s29 = smov [#allocation18]   ;;  %s1377_s24 = smov 128  }
 0x23c   : > { %s799_s13 = sshll.u32 %s1376_s29, 4  ;;  %s1378_s16 = smov 8   ;;  %s800_s13 = int_to_ptr.vmem [resolvable:$true] %s799_s13 }
 0x23d   : > { %981 = dma.vmem_to_hbm [thread:$0]  (%p1013_p3), %s800_s13, 256, %s802_s7, [#allocation10], %s1377_s24, %s1377_s24, %s1378_s16  }
 0x23e   : > { %1334 = dma.done.wait (%p1013_p3), [#allocation10], 256  }
 0x23f   : > { %1336 = vsyncadd (%p1013_p3), [#allocation10], 4294967040 }
 0x240 PF: > { %s20_s26 = sadd.s32 1, %s1359_s26   ;;  %s1654_s27 = sld [smem:[#allocation25_spill]] }
 0x241   : > { %p17_p4 = scmp.ge.s32.totalorder %s20_s26, 5   ;;  %s1655_s21 = smov %s1343_s22 }
 0x242   : > { %s1656_s22 = smov %s1347_s23  ;;  %s1657_s23 = smov %s1503_s12 }
 0x243   : > { %s1658_s24 = smov %s1355_s25  ;;  %19 = sbr.rel (!%p17_p4) target bundleno = 12 (0xc), region = 118 }
 0x246   : > { %s1659_s25 = smov %s1654_s27 }
 0x248   :  { %818 = vsyncpa [#allocation9], 1 }
 0x249   :  { %820 = vsyncpa [#allocation9 + $0x1], 1 }
 0x24a   :  { %821 = vsyncpa [#allocation12], 1 }
 0x24b   :  { %822 = vsyncpa [#allocation17], 1 }
 0x24c   :  { %823 = vsyncpa [#allocation10], 1 }
 0x24d   :  { %825 = vsyncpa [#allocation10 + $0x1], 1 }

</bundles_post_ra>
